<compile_context>
chip_gen: v7x
topology: tpu7x:2x2x1
jax: 0.10.0
libtpu: 0.0.40
codegen_flags: <defaults>
</compile_context>

<pallas_src>
import jax
import jax.numpy as jnp
import numpy as np
from jax import lax
from jax.experimental import pallas as pl
from jax.experimental.pallas import tpu as pltpu


def rgb_differ_kernel(a_ref, c_ref, x_ref, o_ref):
    """out = A @ x + c on one (T, TILE_F) feature slab of batch 0.

    A is the lower-triangular closed form of the temporal recurrence
    (A[t,k] ~= (-0.4)**(t-k)); c carries the accumulated "+3" offsets.  The
    contraction runs on the MXU (HIGHEST precision keeps the non-bf16-exact
    coefficients f32-accurate); the block is written with a single full-block
    store (masked only on a padded last grid step).
    """
    acc = jnp.dot(a_ref[...], x_ref[...],
                  preferred_element_type=jnp.float32,
                  precision=lax.Precision.HIGHEST)
    # c_ref is (T, 1): lane-broadcast add of the per-frame constant offset.
    o_ref[...] = (acc + c_ref[...]).astype(o_ref.dtype)


def _recurrence_constants(T):
    """A[t,k], c[t] such that out[t] = sum_k A[t,k]*x[k] + c[t] reproduces
    out[0] = x[0]; out[t] = x[t] + 0.6*out[t-1] + 3 - out[t-1].

    c is computed with the same sequential float32 ops as the PyTorch trace so
    the (input-independent) last batch matches bit-for-bit.
    """
    A = np.zeros((T, T), dtype=np.float32)
    c = np.zeros((T, 1), dtype=np.float32)
    A[0, 0] = 1.0
    for t in range(1, T):
        A[t, :] = np.float32(-0.4) * A[t - 1, :]
        A[t, t] = 1.0
        c[t, 0] = c[t - 1, 0] * np.float32(0.6) + np.float32(3.0) - c[t - 1, 0]
    return A, c


def _choose_tile_f(F, T, dtype_bytes):
    """Lane-aligned feature tile: ~512 KiB blocks (double-buffered in+out stays
    far under scoped VMEM on v5e/v6e/v7x), with >=2 grid steps whenever the
    feature dim allows (pipeline overlap + v7x dual-core sharding).  Used with
    a cdiv grid, so F never needs to divide the tile."""
    LANE = 128
    f_pad = -(-F // LANE) * LANE              # F rounded up to a lane multiple
    if f_pad < 2 * LANE:
        return f_pad                          # single tiny block
    target = max(LANE, ((512 * 1024) // (T * dtype_bytes)) // LANE * LANE)
    steps = 4 if f_pad >= 2048 else 2         # prefer 4 steps once tiles stay >=512 lanes
    cap = max(LANE, (f_pad // steps) // LANE * LANE)
    return min(target, cap)


def rgb_differ_forward(x):
    """x: (B, T, C, H, W) float32  ->  (B, T, W, H, C) float32."""
    B, T, C, H, W = x.shape
    F = C * H * W
    dtype = x.dtype

    A_np, c_np = _recurrence_constants(T)
    A = jnp.asarray(A_np)
    c = jnp.asarray(c_np)

    tile_f = _choose_tile_f(F, T, dtype.itemsize)

    # Free bitcast reshape; no batch-0 slice is materialized -- the BlockSpec
    # below pins the (squeezed) batch index to 0, so only batch 0 is DMA'd.
    x_flat = x.reshape(B, T, F)

    out0 = pl.pallas_call(
        rgb_differ_kernel,
        out_shape=jax.ShapeDtypeStruct((T, F), dtype),
        grid=(pl.cdiv(F, tile_f),),
        in_specs=[
            pl.BlockSpec((T, T), lambda j: (0, 0)),            # A: constant block
            pl.BlockSpec((T, 1), lambda j: (0, 0)),            # c: constant block
            pl.BlockSpec((None, T, tile_f), lambda j: (0, 0, j)),  # batch 0 only
        ],
        out_specs=pl.BlockSpec((T, tile_f), lambda j: (0, j)),
        compiler_params=pltpu.CompilerParams(
            dimension_semantics=("parallel",)),
        cost_estimate=pl.CostEstimate(
            flops=2 * T * T * F,
            transcendentals=0,
            bytes_accessed=2 * T * F * dtype.itemsize),
    )(A, c, x_flat)

    # permute(0,1,4,3,2): (T,C,H,W) -> (T,W,H,C), applied to batch 0 only
    # (the last batch is spatially constant, the rest is zeros).
    out0 = jnp.transpose(out0.reshape(T, C, H, W), (0, 3, 2, 1))

    # Fused output assembly: [computed batch 0 | zero middle | constant last].
    parts = [out0[None]]
    if B > 2:
        parts.append(jnp.zeros((B - 2, T, W, H, C), dtype))
    if B > 1:
        last = jnp.broadcast_to(c.reshape(1, T, 1, 1, 1),
                                (1, T, W, H, C)).astype(dtype)
        parts.append(last)
    out = jnp.concatenate(parts, axis=0) if len(parts) > 1 else parts[0]
    # .cuda() in forward() is a device move -> no-op under JAX.
    return out


def reference_forward(x_np):
    """Literal numpy re-trace of the PyTorch in-place double loop."""
    s = np.array(x_np, dtype=np.float32).copy()
    B, T = s.shape[0], s.shape[1]
    for b in range(B):
        for t in range(T):
            if t == 0:
                s[1:] = 0.0
            else:
                s[b, t] = s[b, t] + s[b, t - 1] * 0.6 + 3.0 - s[b, t - 1]
    return np.transpose(s, (0, 1, 4, 3, 2))


if __name__ == "__main__":
    key = jax.random.PRNGKey(0)
    # image_size/clip_size/patch_size/dim only feed self.temporal_mult, which
    # forward() never calls, so no weights are needed for the forward pass.

    test_shapes = [
        (2, 8, 3, 16, 16),   # module defaults (ch=3), constant last batch
        (3, 8, 3, 64, 64),   # B>2 (zeroed middle batch) + multi-step F grid
        (1, 8, 3, 16, 16),   # B=1 edge case: only the data-dependent batch
    ]

    for i, shape in enumerate(test_shapes):
        x = jax.random.normal(jax.random.fold_in(key, i), shape, dtype=jnp.float32)
        out = jax.block_until_ready(rgb_differ_forward(x))
        ref = reference_forward(np.asarray(x))
        assert out.shape == ref.shape, (out.shape, ref.shape)
        np.testing.assert_allclose(np.asarray(out), ref, rtol=1e-5, atol=1e-5)

    print("KERNEL_OK")
</pallas_src>

<mosaic_0001>
module attributes {stable_mosaic.version = 11 : i64} {
  func.func @rgb_differ_kernel(%arg0: i32, %arg1: memref<8x8xf32, #tpu.memory_space<vmem>>, %arg2: memref<8x1xf32, #tpu.memory_space<vmem>>, %arg3: memref<1x8x384xf32, #tpu.memory_space<vmem>>, %arg4: memref<8x384xf32, #tpu.memory_space<vmem>>) attributes {dimension_semantics = [#tpu.dimension_semantics<parallel>], iteration_bounds = array<i64: 2>, scalar_prefetch = 0 : i64, scratch_operands = 0 : i64, tpu.core_type = #tpu.core_type<tc>, window_params = [{pipeline_mode = #tpu.pipeline_mode<synchronous>, transform_indices = @transform_0, window_bounds = array<i64: 8, 8>}, {pipeline_mode = #tpu.pipeline_mode<synchronous>, transform_indices = @transform_1, window_bounds = array<i64: 8, 1>}, {transform_indices = @transform_2, window_bounds = array<i64: 1, 8, 384>}, {transform_indices = @transform_3, window_bounds = array<i64: 8, 384>}]} {
    %c0 = arith.constant 0 : index
    %c0_0 = arith.constant 0 : index
    %0 = vector.load %arg1[%c0, %c0_0] : memref<8x8xf32, #tpu.memory_space<vmem>>, vector<8x8xf32>
    %c0_1 = arith.constant 0 : index
    %c0_2 = arith.constant 0 : index
    %c0_3 = arith.constant 0 : index
    %1 = vector.load %arg3[%c0_1, %c0_2, %c0_3] : memref<1x8x384xf32, #tpu.memory_space<vmem>>, vector<1x8x384xf32>
    %2 = vector.shape_cast %1 : vector<1x8x384xf32> to vector<8x384xf32>
    %cst = arith.constant dense<0.000000e+00> : vector<8x384xf32>
    %3 = tpu.matmul %0, %2, %cst {dimension_numbers = #tpu.dot_dimension_numbers<[1], [0], [0], [1], [0, 0, 1, 1], [], []>, precision = #tpu.contract_precision<fp32>} : vector<8x8xf32>, vector<8x384xf32>, vector<8x384xf32> -> vector<8x384xf32>
    %c0_4 = arith.constant 0 : index
    %c0_5 = arith.constant 0 : index
    %4 = vector.load %arg2[%c0_4, %c0_5] : memref<8x1xf32, #tpu.memory_space<vmem>>, vector<8x1xf32>
    %5 = vector.broadcast %4 : vector<8x1xf32> to vector<8x384xf32>
    %6 = arith.addf %3, %5 : vector<8x384xf32>
    %c0_6 = arith.constant 0 : index
    %c0_7 = arith.constant 0 : index
    %7 = vector.load %arg4[%c0_6, %c0_7] : memref<8x384xf32, #tpu.memory_space<vmem>>, vector<8x384xf32>
    tpu.vector_store %arg4[%c0_6, %c0_7], %6 {strides = array<i32>} : memref<8x384xf32, #tpu.memory_space<vmem>>, vector<8x384xf32>,
    return
  }
  func.func @transform_0(%arg0: i32) -> (i32, i32) {
    %c0_i32 = arith.constant 0 : i32
    %c0_i32_0 = arith.constant 0 : i32
    %c0_i32_1 = arith.constant 0 : i32
    return %c0_i32, %c0_i32_0 : i32, i32
  }
  func.func @transform_1(%arg0: i32) -> (i32, i32) {
    %c0_i32 = arith.constant 0 : i32
    %c0_i32_0 = arith.constant 0 : i32
    %c0_i32_1 = arith.constant 0 : i32
    return %c0_i32, %c0_i32_0 : i32, i32
  }
  func.func @transform_2(%arg0: i32) -> (i32, i32, i32) {
    %c0_i32 = arith.constant 0 : i32
    %c0_i32_0 = arith.constant 0 : i32
    %c0_i32_1 = arith.constant 0 : i32
    return %c0_i32, %c0_i32_0, %arg0 : i32, i32, i32
  }
  func.func @transform_3(%arg0: i32) -> (i32, i32) {
    %c0_i32 = arith.constant 0 : i32
    %c0_i32_0 = arith.constant 0 : i32
    return %c0_i32, %arg0 : i32, i32
  }
}

</mosaic_0001>

<bundles_post_ra>
// kernel: tpu_custom_call.1
= control target key start
LH: loop header
LB: loop body
LE: loop exit
PB: predicated region body
PF: predicated region fallthrough
CT: control target
= control target key end

     0   :  { %8 = vsyncpa [#allocation3], 0  ;;  %s1641_s0 = inlined_call_operand.vmem [shape: f32[8,8], index: 0, kind: input, shape index: {}]   ;;  %s1642_s1 = inlined_call_operand.vmem [shape: f32[8,1], index: 1, kind: input, shape index: {}]   ;;  %s1643_s2 = inlined_call_operand.hbm [shape: f32[2,8,768], index: 2, kind: input, shape index: {}]   ;;  %s1644_s3 = inlined_call_operand.hbm [shape: f32[8,768], index: 3, kind: output, shape index: {}]  }
   0x1   :  { %10 = vsyncpa [#allocation3 + $0x1], 0 }
   0x2   :  { %11 = vsyncpa [#allocation4], 0 }
   0x3   :  { %13 = vsyncpa [#allocation4 + $0x1], 0  ;;  %s1452_s12 = smov 0   ;;  %s1454_s13 = smov 0  }
   0x4   :  { %s1456_s14 = smov 0   ;;  %s1458_s15 = smov 0  }
   0x5 LB: > { %s1473_s16 = sadd.s32 4294967295, %s1425_s15   ;;  %s1202_s17 = sadd.s32 4294967294, %s1425_s15   ;;  %s1425_s15 = sphi %s1458_s15, %s1658_s15   ;;  %s1421_s14 = sphi %s1456_s14, %s1657_s14   ;;  %s1417_s13 = sphi %s1454_s13, %s1656_s13   ;;  %s1413_s12 = sphi %s1452_s12, %s1655_s12  }
   0x6   : > { %s1477_s18 = sadd.s32 1, %s1425_s15   ;;  %s68_s19 = sadd.s32 1, %s1421_s14 }
   0x7   : > { %s65_s20 = ssub.s32 %s1425_s15, %s1477_s18  ;;  %p75_p0 = scmp.ne.s32.totalorder %s1421_s14, %s1417_s13 }
   0x8   : > { %p66_p1 = scmp.eq.s32.totalorder %s65_s20, 0  ;;  %p76_p2 = scmp.eq.s32.totalorder %s1425_s15, 0 }
   0x9   : > { %p81_p3 = scmp.ne.s32.totalorder %s1417_s13, %s1413_s12  ;;  %p82_p4 = scmp.eq.s32.totalorder %s1473_s16, 0 }
   0xa   : > { %s1489_s21 = scalar_select %p66_p1, %s1421_s14, %s68_s19  }
   0xb   : > { %p77_p5 = por %p76_p2, %p75_p0  ;;  %p1491_p6 = por %p82_p4, %p81_p3 }
   0xc   : > { %p105_p7 = scmp.eq.s32.totalorder %s1473_s16, 1  ;;  %p111_p8 = scmp.eq.s32.totalorder %s1202_s17, 1 }
   0xd   : > { %p1291_p10 = scmp.lt.s32.totalorder %s1425_s15, 2  ;;  %s137_s25 = sand.u32 1, %s1421_s14  }
   0xe   : > { %p1498_p11 = por %p105_p7, %p75_p0  ;;  %p1502_p12 = por %p111_p8, %p81_p3 }
   0xf   : > { %s1210_s26 = smul.u32 384, %s1425_s15  ;;  %p1513_p13 = pnand %p1291_p10, %p77_p5 }
  0x10   : > { %s1647_s23 = scalar_select %p1498_p11, 1, 0 }
  0x11   : > { %s1648_s24 = scalar_select %p1502_p12, 1, 0 }
  0x12   : > { %s1277_s27 = smul.u32 24, %s137_s25  ;;  %s1511_s30 = scalar_lea.hbm %s1643_s2, %s1210_s26 }
  0x13   : > { %s138_s7 = scalar_lea.sflag [#allocation3], %s137_s25  ;;  %s1329_s8 = scalar_lea.hbm %s1511_s30, 384 }
  0x14   : > { %s141_s5 = scalar_lea.vmem [#allocation2], %s1277_s27  ;;  %p1330_p2 = scmp.ne.s32.totalorder %s1511_s30, %s1329_s8 }
  0x15   : > { %s149_s6 = sshll.u32 %s141_s5, 4  ;;  %p1331_p3 = pneg %p1513_p13  ;;  %s1518_s6 = int_to_ptr.vmem [resolvable:$true] %s149_s6 }
  0x16   : > { %s1334_s11 = scalar_lea.hbm %s1643_s2, 1536  ;;  %p1335_p7 = scmp.lt.u32.totalorder %s1511_s30, %s1643_s2 }
  0x17   : > { %p1332_p4 = pnand %p1331_p3, %p1330_p2  ;;  %p1336_p8 = scmp.lt.u32.totalorder %s1334_s11, %s1329_s8 }
  0x18   : > { %p1338_p9 = scmp.lt.u32.totalorder %s1329_s8, %s1511_s30 }
  0x19   : > { %p1333_p5 = pneg %p1332_p4  ;;  %p1337_p10 = por %p1336_p8, %p1335_p7 }
  0x1b   : > { %p1339_p0 = por %p1338_p9, %p1337_p10 }
  0x1d   : > { %p1340_p1 = pnand %p1339_p0, %p1333_p5 }
  0x1f   : > { %1343 = shalt.err (!%p1340_p1)
}
  0x20   : > { %s1344_s20 = scalar_lea.vmem %s1518_s6, 384  ;;  %s1427_s25 = smov [#allocation2]  }
  0x21   : > { %p1345_p2 = scmp.ne.s32.totalorder %s1518_s6, %s1344_s20  ;;  %s1349_s26 = sshll.u32 %s1427_s25, 4  ;;  %s1350_s26 = int_to_ptr.vmem [resolvable:$false] %s1349_s26 }
  0x22   : > { %s1351_s27 = scalar_lea.vmem %s1350_s26, 768  ;;  %p1352_p11 = scmp.lt.s32.totalorder %s1518_s6, %s1350_s26 }
  0x23   : > { %p1347_p4 = pnand %p1345_p2, %p1331_p3  ;;  %p1353_p7 = scmp.lt.s32.totalorder %s1351_s27, %s1344_s20 }
  0x25   : > { %p1348_p12 = pneg %p1347_p4  ;;  %p1354_p8 = por %p1353_p7, %p1352_p11 }
  0x27   : > { %p1355_p9 = pnand %p1354_p8, %p1348_p12 }
  0x29   : > { %1358 = shalt.err (!%p1355_p9)
}
  0x2a   : > { %1286 = dma.hbm_to_vmem [thread:$0]  (!%p1513_p13), %s1511_s30, 384, %s1518_s6, %s138_s7  }
  0x2b   : > { %p1650_p0 = scmp.lt.s32.totalorder %s1425_s15, 3  ;;  %p1651_p1 = scmp.ge.s32.totalorder %s1425_s15, 1 }
  0x2d   : > { %p155_p3 = pnand %p1651_p1, %p1650_p0 }
  0x2e   : > { %s1551_s28 = sand.u32 (!%p155_p3), 1, %s1417_s13  }
  0x2f   : > { %158 = sbr.rel (%p155_p3) target bundleno = 338 (0x152), region = 32  ;;  %s161_s5 = scalar_lea.sflag (!%p155_p3), [#allocation3], %s1551_s28 }
  0x30   : > { %s1278_s29 = smul.u32 (!%p155_p3), 24, %s1551_s28 }
  0x32   : > { %s164_s4 = scalar_lea.vmem (!%p155_p3), [#allocation2], %s1278_s29 }
  0x36   : > { %1404 = dma.done.wait (%p1491_p6), %s161_s5, 384  }
  0x37   : > { %1406 = vsyncadd (%p1491_p6), %s161_s5, 4294966912  ;;  %v1428_v0 = vmov 0.0   ;;  %vm1429_vm0 = vmmov 0   ;;  %v1430_v1 = vmov 0   ;;  %vm199_vm1 = vcmask 64512   ;;  %v191_v2 = vld [vmem:[%s164_s4 + $0x8] sm:$0xff] }
  0x38   : > { %1224 = vmatprep.subr.mxu1 %v1428_v0  ;;  %269 = vmatprep.mubr.f32.mxu0 %v1428_v0  ;;  %v190_v3 = vld [vmem:[%s164_s4] sm:$0xff]  ;;  %v192_v4 = vld [vmem:[%s164_s4 + $0x10] sm:$0xff]  ;;  %v203_v5 = vand.u32 4294901760, %v191_v2  ;;  %s1211_s8 = smul.u32 384, %s1473_s16  ;;  %s186_s9 = scalar_lea.vmem [#allocation5], %s1278_s29 }
  0x39   : > { %1226 = vmatprep.mubr.msk.f32.mxu1 %vm1429_vm0, %v1428_v0  ;;  %1328 = vset.pattern.permute.xlu0 %v1430_v1  ;;  %v205_v6 = vand.u32 4294901760, %v190_v3  ;;  %v669_v7 = vand.u32 4294901760, %v192_v4  ;;  %v189_v8 = vld [vmem:[%s1641_s0] sm:$0xff]  ;;  %s1132_s10 = sshll.u32 %s186_s9, 4  ;;  %s1118_s16 = scalar_lea.sflag [#allocation4], %s1551_s28  ;;  %s1599_s10 = int_to_ptr.vmem [resolvable:$true] %s1132_s10 }
  0x3a   : > { %v193_v9 = vld [vmem:[%s1642_s1] sm:$0xff]  ;;  %v201_v10 = vsel %vm199_vm1, %v189_v8, 0  ;;  %204 = vmatprep.subr.mxu0 %v203_v5  ;;  %v282_v12 = vsub.f32 %v191_v2, %v203_v5  ;;  %s1597_s19 = scalar_lea.hbm %s1644_s3, %s1211_s8  ;;  %s1359_s20 = scalar_lea.vmem %s1599_s10, 384 }
  0x3b   : > { %196 = vperm.xlu0 %1328, %v193_v9   ;;  %v288_v11 = vsub.f32 %v190_v3, %v205_v6  ;;  %1225 = vmatpush3.msra.mxu1 %v669_v7  ;;  %v746_v13 = vsub.f32 %v192_v4, %v669_v7  ;;  %v270_v14 = vand.u32 4294901760, %v201_v10  ;;  %p1360_p6 = scmp.ne.s32.totalorder %s1599_s10, %s1359_s20  ;;  %p1652_p11 = scmp.ne.s32.totalorder %s1647_s23, 0 }
  0x3c   : > { %206 = vmatpush1.msra.mxu0 %v205_v6  ;;  %1229 = vmatprep.subr.mxu1 %v1428_v0  ;;  %v283_v15 = vand.u32 4294901760, %v282_v12  ;;  %s1431_s25 = smov [#allocation5]  }
  0x3d   : > { %v271_v16 = vsub.f32 %v201_v10, %v270_v14  ;;  %v289_v17 = vand.u32 4294901760, %v288_v11  ;;  %v747_v18 = vand.u32 4294901760, %v746_v13  ;;  %p1361_p12 = pnand %p1360_p6, %p1652_p11  ;;  %s1363_s26 = sshll.u32 %s1431_s25, 4  ;;  %s1364_s26 = int_to_ptr.vmem [resolvable:$false] %s1363_s26 }
  0x3e   : > { %v284_v19 = vsub.f32 %v282_v12, %v283_v15  ;;  %s1365_s27 = scalar_lea.vmem %s1364_s26, 768  ;;  %p1366_p5 = scmp.lt.s32.totalorder %s1599_s10, %s1364_s26 }
  0x3f   : > { %v272_v20 = vand.u32 4294901760, %v271_v16  ;;  %v290_v21 = vsub.f32 %v288_v11, %v289_v17  ;;  %v748_v22 = vsub.f32 %v746_v13, %v747_v18  ;;  %p1362_p13 = pneg %p1361_p12  ;;  %p1367_p10 = scmp.lt.s32.totalorder %s1365_s27, %s1359_s20 }
  0x40   : > { %v285_v23 = vand.u32 4294901760, %v284_v19 }
  0x41   : > { %v273_v24 = vsub.f32 %v271_v16, %v272_v20  ;;  %v291_v25 = vand.u32 4294901760, %v290_v21  ;;  %v749_v26 = vand.u32 4294901760, %v748_v22  ;;  %p1368_p2 = por %p1367_p10, %p1366_p5 }
  0x42   : > { %286 = vmatprep.subr.mxu0 %v285_v23 }
  0x43   : > { %v274_v27 = vand.u32 4294901760, %v273_v24  ;;  %p1369_p4 = pnand %p1368_p2, %p1362_p13 }
  0x45   : > { %275 = vmatmul.mubr.f32.vlgmr.msra.gmra.mrb[0].mxu0 %v274_v27  ;;  %1227 = vmatmul.mubr.f32.vlgmr.msra.gmra.mrb[0].mxu1 %v274_v27 }
  0x46   : > { %292 = vmatpush1.msra.mxu0 %v291_v25  ;;  %1230 = vmatpush3.msra.mxu1 %v749_v26 }
  0x47   : > { %355 = vmatprep.mubr.f32.mxu0 %v1428_v0  ;;  %365 = vmatprep.subr.mxu0 %v282_v12 }
  0x48   : > { %1231 = vmatprep.mubr.msk.f32.mxu1 %vm1429_vm0, %v1428_v0  ;;  %1234 = vmatprep.subr.mxu1 %v1428_v0 }
  0x4d   : > { %357 = vmatmul.mubr.f32.vlgmr.msra.gmra.mrb[0].mxu0 %v270_v14  ;;  %1232 = vmatmul.mubr.f32.vlgmr.msra.gmra.mrb[0].mxu1 %v270_v14 }
  0x4e   : > { %368 = vmatpush1.msra.mxu0 %v288_v11  ;;  %1235 = vmatpush3.msra.mxu1 %v746_v13 }
  0x4f   : > { %431 = vmatprep.mubr.f32.mxu0 %v1428_v0  ;;  %441 = vmatprep.subr.mxu0 %v203_v5 }
  0x50   : > { %1236 = vmatprep.mubr.msk.f32.mxu1 %vm1429_vm0, %v1428_v0  ;;  %1239 = vmatprep.subr.mxu1 %v1428_v0 }
  0x55   : > { %434 = vmatmul.mubr.f32.vlgmr.msra.gmra.mrb[0].mxu0 %v271_v16  ;;  %1237 = vmatmul.mubr.f32.vlgmr.msra.gmra.mrb[0].mxu1 %v271_v16 }
  0x56   : > { %443 = vmatpush1.msra.mxu0 %v205_v6  ;;  %1240 = vmatpush3.msra.mxu1 %v669_v7 }
  0x57   : > { %506 = vmatprep.mubr.f32.mxu0 %v1428_v0  ;;  %519 = vmatprep.subr.mxu0 %v283_v15 }
  0x58   : > { %1241 = vmatprep.mubr.msk.f32.mxu1 %vm1429_vm0, %v1428_v0  ;;  %1244 = vmatprep.subr.mxu1 %v1428_v0 }
  0x5d   : > { %510 = vmatmul.mubr.f32.vlgmr.msra.gmra.mrb[0].mxu0 %v272_v20  ;;  %1242 = vmatmul.mubr.f32.vlgmr.msra.gmra.mrb[0].mxu1 %v272_v20 }
  0x5e   : > { %523 = vmatpush1.msra.mxu0 %v289_v17  ;;  %1245 = vmatpush3.msra.mxu1 %v747_v18 }
  0x5f   : > { %586 = vmatprep.mubr.f32.mxu0 %v1428_v0  ;;  %595 = vmatprep.subr.mxu0 %v203_v5 }
  0x60   : > { %1246 = vmatprep.mubr.msk.f32.mxu1 %vm1429_vm0, %v1428_v0  ;;  %1249 = vmatprep.subr.mxu1 %v1428_v0 }
  0x65   : > { %588 = vmatmul.mubr.f32.vlgmr.msra.gmra.mrb[0].mxu0 %v270_v14  ;;  %1247 = vmatmul.mubr.f32.vlgmr.msra.gmra.mrb[0].mxu1 %v270_v14 }
  0x66   : > { %597 = vmatpush1.msra.mxu0 %v205_v6  ;;  %1250 = vmatpush3.msra.mxu1 %v669_v7 }
  0x67   : > { %660 = vmatprep.mubr.f32.mxu0 %v1428_v0  ;;  %1251 = vmatprep.mubr.msk.f32.mxu1 %vm1429_vm0, %v1428_v0 }
  0x6d   : > { %662 = vmatmul.mubr.f32.vlgmr.msra.gmra.mrb[0].mxu0 %v270_v14  ;;  %1252 = vmatmul.mubr.f32.vlgmr.msra.gmra.mrb[0].mxu1 %v270_v14 }
  0xba   : > { %v197_v28 = vpop.permute.xlu0 %196 }
 0x140   : > { %v663_v29 = vpop.f32.mrb[0].mxu0  ;;  %v1110_v30 = vpop.f32.mrb[0].mxu1 }
 0x141   : > { %v1254_v31 = vadd.f32 %v663_v29, %v197_v28  ;;  %v1256_v32 = vadd.f32 %v1110_v30, %v197_v28  ;;  %v665_v33 = vpop.f32.mrb[1].mxu0  ;;  %v1253_v34 = vpop.f32.mrb[1].mxu1 }
 0x142   : > { %v1255_v35 = vadd.f32 %v665_v33, %v197_v28 }
 0x143   : > { %1114 = vst [vmem:[%s186_s9] sm:$0xff] %v1254_v31  ;;  %1116 = vst [vmem:[%s186_s9 + $0x10] sm:$0xff] %v1256_v32 }
 0x144   : > { %1115 = vst [vmem:[%s186_s9 + $0x8] sm:$0xff] %v1255_v35 }
 0x145   : > { %1372 = shalt.err (!%p1369_p4)
}
 0x146   : > { %s1373_s28 = scalar_lea.hbm %s1597_s19, 384  ;;  %s1377_s4 = scalar_lea.hbm %s1644_s3, 768 }
 0x147   : > { %p1374_p7 = scmp.ne.s32.totalorder %s1597_s19, %s1373_s28  ;;  %p1378_p0 = scmp.lt.u32.totalorder %s1597_s19, %s1644_s3 }
 0x148   : > { %p1379_p1 = scmp.lt.u32.totalorder %s1377_s4, %s1373_s28  ;;  %p1381_p6 = scmp.lt.u32.totalorder %s1373_s28, %s1597_s19 }
 0x149   : > { %p1375_p8 = pnand %p1374_p7, %p1652_p11 }
 0x14a   : > { %p1380_p3 = por %p1379_p1, %p1378_p0 }
 0x14b   : > { %p1376_p9 = pneg %p1375_p8 }
 0x14c   : > { %p1382_p12 = por %p1381_p6, %p1380_p3 }
 0x14e   : > { %p1383_p13 = pnand %p1382_p12, %p1376_p9 }
 0x150   : > { %1386 = shalt.err (!%p1383_p13)
}
 0x151   : > { %1281 = dma.vmem_to_hbm [thread:$0]  (%p1652_p11), %s1599_s10, 384, %s1597_s19, %s1118_s16  }
 0x152 PF: > { %s1144_s6 = sand.u32 1, %s1413_s12   ;;  %p1653_p5 = scmp.ne.s32.totalorder %s1648_s24, 0 }
 0x153   : > { %p1654_p10 = scmp.ge.s32.totalorder %s1425_s15, 2  ;;  %s1145_s7 = scalar_lea.sflag [#allocation4], %s1144_s6 }
 0x155   : > { %p1288_p2 = pnand %p1654_p10, %p1653_p5 }
 0x157   : > { %1408 = dma.done.wait (!%p1288_p2), %s1145_s7, 384  }
 0x158   : > { %1410 = vsyncadd (!%p1288_p2), %s1145_s7, 4294966912  ;;  %p16_p4 = scmp.ge.s32.totalorder %s1477_s18, 4   ;;  %s1655_s12 = smov %s1417_s13 }
 0x159   : > { %s1656_s13 = smov %s1421_s14  ;;  %s1657_s14 = smov %s1489_s21 }
 0x15a   : > { %s1658_s15 = smov %s1477_s18  ;;  %18 = sbr.rel (!%p16_p4) target bundleno = 5 (0x5), region = 77 }
 0x161   :  { %1150 = vsyncpa [#allocation3], 1 }
 0x162   :  { %1152 = vsyncpa [#allocation3 + $0x1], 1 }
 0x163   :  { %1153 = vsyncpa [#allocation4], 1 }
 0x164   :  { %1155 = vsyncpa [#allocation4 + $0x1], 1 }

</bundles_post_ra>
